<compile_context>
chip_gen: v7x
topology: tpu7x:2x2x1
jax: 0.10.0
libtpu: 0.0.40
codegen_flags: <defaults>
</compile_context>

<pallas_src>
import functools

import jax
import jax.numpy as jnp
from jax.experimental import pallas as pl
from jax.experimental.pallas import tpu as pltpu

HIDDEN = 100        # self.hidden_dim in the PyTorch module
NUM_LAYERS = 11     # 1 input Linear + 9 hidden Linear + 1 output Linear
FPAD = 128          # padded feature width (lane dimension)


def _mlp_kernel(x_ref, w_ref, b_ref, o_ref):
    # x_ref: (tm, FPAD) f32
    # w_ref: (NUM_LAYERS, FPAD, FPAD) bf16   (resident in VMEM, grid-invariant)
    # b_ref: (NUM_LAYERS, FPAD) f32
    h = x_ref[...]                                      # f32 activations
    for layer in range(NUM_LAYERS):                     # static unroll
        w = w_ref[layer]                                # (FPAD, FPAD) bf16
        b = b_ref[pl.ds(layer, 1), :]                   # (1, FPAD) f32
        # bf16 inputs feed the MXU natively; accumulate in f32.
        h = jnp.dot(h.astype(jnp.bfloat16), w,
                    preferred_element_type=jnp.float32) + b
        if layer < NUM_LAYERS - 1:
            h = jnp.maximum(h, 0.0)                     # ReLU (none after last layer)
    o_ref[...] = h.astype(o_ref.dtype)


@functools.partial(jax.jit, static_argnames=("tm",))
def mlp_pallas(x_pad, w_bf16, b_pad, *, tm):
    n = x_pad.shape[0]
    flops = 2 * NUM_LAYERS * n * FPAD * FPAD
    bytes_accessed = (n * FPAD * 4 * 2                    # activations in + out (f32)
                      + NUM_LAYERS * FPAD * FPAD * 2      # bf16 weights
                      + NUM_LAYERS * FPAD * 4)            # f32 biases
    return pl.pallas_call(
        _mlp_kernel,
        out_shape=jax.ShapeDtypeStruct((n, FPAD), jnp.float32),
        grid_spec=pltpu.PrefetchScalarGridSpec(
            num_scalar_prefetch=0,
            grid=(n // tm,),
            in_specs=[
                pl.BlockSpec((tm, FPAD), lambda i: (i, 0)),
                pl.BlockSpec((NUM_LAYERS, FPAD, FPAD), lambda i: (0, 0, 0)),
                pl.BlockSpec((NUM_LAYERS, FPAD), lambda i: (0, 0)),
            ],
            out_specs=pl.BlockSpec((tm, FPAD), lambda i: (i, 0)),
        ),
        compiler_params=pltpu.CompilerParams(
            dimension_semantics=("parallel",)),
        cost_estimate=pl.CostEstimate(
            flops=flops, transcendentals=0, bytes_accessed=bytes_accessed),
    )(x_pad, w_bf16, b_pad)


def _choose_tm(n):
    """Largest row tile (<=256) that still gives >=2 grid steps (v7x megacore)."""
    for tm in (256, 128, 64, 32, 16, 8):
        if n >= 2 * tm:
            return tm
    return 8


def init_params(key, par_size, pde_size, windows_size=1):
    """Deterministic init mimicking nn.Linear default (uniform +-1/sqrt(fan_in)).

    Weights are stored as [in, out] (transposed vs PyTorch's [out, in]),
    zero-padded into [NUM_LAYERS, FPAD, FPAD] and cast to bf16 for the MXU.
    Biases are zero-padded f32 of shape [NUM_LAYERS, FPAD].
    """
    in_dim = windows_size * pde_size + par_size
    assert in_dim <= FPAD and HIDDEN <= FPAD and pde_size <= FPAD
    dims = [in_dim] + [HIDDEN] * (NUM_LAYERS - 1) + [pde_size]  # len NUM_LAYERS+1

    w_pad = jnp.zeros((NUM_LAYERS, FPAD, FPAD), jnp.float32)
    b_pad = jnp.zeros((NUM_LAYERS, FPAD), jnp.float32)
    keys = jax.random.split(key, 2 * NUM_LAYERS)
    for l in range(NUM_LAYERS):
        fan_in, fan_out = dims[l], dims[l + 1]
        bound = 1.0 / jnp.sqrt(fan_in)
        w = jax.random.uniform(keys[2 * l], (fan_in, fan_out),
                               jnp.float32, -bound, bound)
        b = jax.random.uniform(keys[2 * l + 1], (fan_out,),
                               jnp.float32, -bound, bound)
        w_pad = w_pad.at[l, :fan_in, :fan_out].set(w)
        b_pad = b_pad.at[l, :fan_out].set(b)
    return w_pad.astype(jnp.bfloat16), b_pad, in_dim


def sequential_prediction(theta, x, w_bf16, b_pad, pde_size, in_dim):
    """Forward pass of SequetialPrediction.

    theta: [B, par_size]   x: [B, S, windows_size*pde_size]
    returns: [B*S, pde_size]
    """
    B, S, _ = x.shape
    # ParConcatenator fused with lane-padding: one concatenate builds [B,S,FPAD].
    theta_rep = jnp.broadcast_to(theta[:, None, :].astype(jnp.float32),
                                 (B, S, theta.shape[-1]))
    feat_zeros = jnp.zeros((B, S, FPAD - in_dim), jnp.float32)
    cat = jnp.concatenate([x.astype(jnp.float32), theta_rep, feat_zeros], axis=2)
    flat = cat.reshape(B * S, FPAD)                     # [N, FPAD]

    n = B * S
    tm = _choose_tm(n)
    n_pad = -(-n // tm) * tm
    if n_pad > n:
        flat = jnp.pad(flat, ((0, n_pad - n), (0, 0)))  # single pad pass

    out_pad = mlp_pallas(flat, w_bf16, b_pad, tm=tm)
    return out_pad[:n, :pde_size]


def _reference(theta, x, w_bf16, b_pad, in_dim, pde_size):
    """Pure-JAX reference with matching bf16-input / f32-accumulate quantization."""
    B, S, _ = x.shape
    theta_rep = jnp.broadcast_to(theta[:, None, :], (B, S, theta.shape[-1]))
    h = jnp.concatenate([x, theta_rep], axis=2).reshape(-1, in_dim)
    h = jnp.pad(h.astype(jnp.float32), ((0, 0), (0, FPAD - in_dim)))
    for l in range(NUM_LAYERS):
        h = jnp.dot(h.astype(jnp.bfloat16), w_bf16[l],
                    preferred_element_type=jnp.float32) + b_pad[l]
        if l < NUM_LAYERS - 1:
            h = jnp.maximum(h, 0.0)
    return h[:, :pde_size]


if __name__ == "__main__":
    # Small shapes consistent with the module: batch=2, seq=8,
    # pde_size=4, par_size=4, windows_size=1.
    B, S = 2, 8
    pde_size, par_size, windows_size = 4, 4, 1

    key = jax.random.PRNGKey(0)
    k_theta, k_x, k_params = jax.random.split(key, 3)

    theta = jax.random.normal(k_theta, (B, par_size), jnp.float32)
    x = jax.random.normal(k_x, (B, S, windows_size * pde_size), jnp.float32)

    w_bf16, b_pad, in_dim = init_params(k_params, par_size, pde_size, windows_size)

    out = sequential_prediction(theta, x, w_bf16, b_pad, pde_size, in_dim)
    out = jax.block_until_ready(out)

    ref = _reference(theta, x, w_bf16, b_pad, in_dim, pde_size)
    assert out.shape == (B * S, pde_size), out.shape
    assert jnp.allclose(out, ref, atol=2e-2, rtol=2e-2), "mismatch vs reference"

    print("KERNEL_OK")
</pallas_src>

<mosaic_0001>
module attributes {stable_mosaic.version = 11 : i64} {
  func.func @_mlp_kernel(%arg0: i32, %arg1: memref<8x128xf32, #tpu.memory_space<vmem>>, %arg2: memref<11x128x128xbf16, #tpu.memory_space<vmem>>, %arg3: memref<11x128xf32, #tpu.memory_space<vmem>>, %arg4: memref<8x128xf32, #tpu.memory_space<vmem>>) attributes {dimension_semantics = [#tpu.dimension_semantics<parallel>], iteration_bounds = array<i64: 2>, scalar_prefetch = 0 : i64, scratch_operands = 0 : i64, tpu.core_type = #tpu.core_type<tc>, window_params = [{transform_indices = @transform_0, window_bounds = array<i64: 8, 128>}, {pipeline_mode = #tpu.pipeline_mode<synchronous>, transform_indices = @transform_1, window_bounds = array<i64: 11, 128, 128>}, {pipeline_mode = #tpu.pipeline_mode<synchronous>, transform_indices = @transform_2, window_bounds = array<i64: 11, 128>}, {transform_indices = @transform_3, window_bounds = array<i64: 8, 128>}]} {
    %c0 = arith.constant 0 : index
    %c0_0 = arith.constant 0 : index
    %0 = vector.load %arg1[%c0, %c0_0] : memref<8x128xf32, #tpu.memory_space<vmem>>, vector<8x128xf32>
    %c0_1 = arith.constant 0 : index
    %c0_2 = arith.constant 0 : index
    %c0_3 = arith.constant 0 : index
    %1 = vector.load %arg2[%c0_1, %c0_2, %c0_3] : memref<11x128x128xbf16, #tpu.memory_space<vmem>>, vector<1x128x128xbf16>
    %2 = vector.shape_cast %1 : vector<1x128x128xbf16> to vector<128x128xbf16>
    %c0_4 = arith.constant 0 : index
    %c0_5 = arith.constant 0 : index
    %3 = vector.load %arg3[%c0_4, %c0_5] : memref<11x128xf32, #tpu.memory_space<vmem>>, vector<1x128xf32>
    %4 = arith.truncf %0 : vector<8x128xf32> to vector<8x128xbf16>
    %cst = arith.constant dense<0.000000e+00> : vector<8x128xf32>
    %5 = tpu.matmul %4, %2, %cst {dimension_numbers = #tpu.dot_dimension_numbers<[1], [0], [0], [1], [0, 0, 1, 1], [], []>} : vector<8x128xbf16>, vector<128x128xbf16>, vector<8x128xf32> -> vector<8x128xf32>
    %6 = vector.broadcast %3 : vector<1x128xf32> to vector<8x128xf32>
    %7 = arith.addf %5, %6 : vector<8x128xf32>
    %cst_6 = arith.constant 0.000000e+00 : f32
    %8 = vector.broadcast %cst_6 : f32 to vector<8x128xf32>
    %9 = arith.maximumf %7, %8 : vector<8x128xf32>
    %c1 = arith.constant 1 : index
    %c0_7 = arith.constant 0 : index
    %c0_8 = arith.constant 0 : index
    %10 = vector.load %arg2[%c1, %c0_7, %c0_8] : memref<11x128x128xbf16, #tpu.memory_space<vmem>>, vector<1x128x128xbf16>
    %11 = vector.shape_cast %10 : vector<1x128x128xbf16> to vector<128x128xbf16>
    %c1_9 = arith.constant 1 : index
    %c0_10 = arith.constant 0 : index
    %12 = vector.load %arg3[%c1_9, %c0_10] : memref<11x128xf32, #tpu.memory_space<vmem>>, vector<1x128xf32>
    %13 = arith.truncf %9 : vector<8x128xf32> to vector<8x128xbf16>
    %cst_11 = arith.constant dense<0.000000e+00> : vector<8x128xf32>
    %14 = tpu.matmul %13, %11, %cst_11 {dimension_numbers = #tpu.dot_dimension_numbers<[1], [0], [0], [1], [0, 0, 1, 1], [], []>} : vector<8x128xbf16>, vector<128x128xbf16>, vector<8x128xf32> -> vector<8x128xf32>
    %15 = vector.broadcast %12 : vector<1x128xf32> to vector<8x128xf32>
    %16 = arith.addf %14, %15 : vector<8x128xf32>
    %cst_12 = arith.constant 0.000000e+00 : f32
    %17 = vector.broadcast %cst_12 : f32 to vector<8x128xf32>
    %18 = arith.maximumf %16, %17 : vector<8x128xf32>
    %c2 = arith.constant 2 : index
    %c0_13 = arith.constant 0 : index
    %c0_14 = arith.constant 0 : index
    %19 = vector.load %arg2[%c2, %c0_13, %c0_14] : memref<11x128x128xbf16, #tpu.memory_space<vmem>>, vector<1x128x128xbf16>
    %20 = vector.shape_cast %19 : vector<1x128x128xbf16> to vector<128x128xbf16>
    %c2_15 = arith.constant 2 : index
    %c0_16 = arith.constant 0 : index
    %21 = vector.load %arg3[%c2_15, %c0_16] : memref<11x128xf32, #tpu.memory_space<vmem>>, vector<1x128xf32>
    %22 = arith.truncf %18 : vector<8x128xf32> to vector<8x128xbf16>
    %cst_17 = arith.constant dense<0.000000e+00> : vector<8x128xf32>
    %23 = tpu.matmul %22, %20, %cst_17 {dimension_numbers = #tpu.dot_dimension_numbers<[1], [0], [0], [1], [0, 0, 1, 1], [], []>} : vector<8x128xbf16>, vector<128x128xbf16>, vector<8x128xf32> -> vector<8x128xf32>
    %24 = vector.broadcast %21 : vector<1x128xf32> to vector<8x128xf32>
    %25 = arith.addf %23, %24 : vector<8x128xf32>
    %cst_18 = arith.constant 0.000000e+00 : f32
    %26 = vector.broadcast %cst_18 : f32 to vector<8x128xf32>
    %27 = arith.maximumf %25, %26 : vector<8x128xf32>
    %c3 = arith.constant 3 : index
    %c0_19 = arith.constant 0 : index
    %c0_20 = arith.constant 0 : index
    %28 = vector.load %arg2[%c3, %c0_19, %c0_20] : memref<11x128x128xbf16, #tpu.memory_space<vmem>>, vector<1x128x128xbf16>
    %29 = vector.shape_cast %28 : vector<1x128x128xbf16> to vector<128x128xbf16>
    %c3_21 = arith.constant 3 : index
    %c0_22 = arith.constant 0 : index
    %30 = vector.load %arg3[%c3_21, %c0_22] : memref<11x128xf32, #tpu.memory_space<vmem>>, vector<1x128xf32>
    %31 = arith.truncf %27 : vector<8x128xf32> to vector<8x128xbf16>
    %cst_23 = arith.constant dense<0.000000e+00> : vector<8x128xf32>
    %32 = tpu.matmul %31, %29, %cst_23 {dimension_numbers = #tpu.dot_dimension_numbers<[1], [0], [0], [1], [0, 0, 1, 1], [], []>} : vector<8x128xbf16>, vector<128x128xbf16>, vector<8x128xf32> -> vector<8x128xf32>
    %33 = vector.broadcast %30 : vector<1x128xf32> to vector<8x128xf32>
    %34 = arith.addf %32, %33 : vector<8x128xf32>
    %cst_24 = arith.constant 0.000000e+00 : f32
    %35 = vector.broadcast %cst_24 : f32 to vector<8x128xf32>
    %36 = arith.maximumf %34, %35 : vector<8x128xf32>
    %c4 = arith.constant 4 : index
    %c0_25 = arith.constant 0 : index
    %c0_26 = arith.constant 0 : index
    %37 = vector.load %arg2[%c4, %c0_25, %c0_26] : memref<11x128x128xbf16, #tpu.memory_space<vmem>>, vector<1x128x128xbf16>
    %38 = vector.shape_cast %37 : vector<1x128x128xbf16> to vector<128x128xbf16>
    %c4_27 = arith.constant 4 : index
    %c0_28 = arith.constant 0 : index
    %39 = vector.load %arg3[%c4_27, %c0_28] : memref<11x128xf32, #tpu.memory_space<vmem>>, vector<1x128xf32>
    %40 = arith.truncf %36 : vector<8x128xf32> to vector<8x128xbf16>
    %cst_29 = arith.constant dense<0.000000e+00> : vector<8x128xf32>
    %41 = tpu.matmul %40, %38, %cst_29 {dimension_numbers = #tpu.dot_dimension_numbers<[1], [0], [0], [1], [0, 0, 1, 1], [], []>} : vector<8x128xbf16>, vector<128x128xbf16>, vector<8x128xf32> -> vector<8x128xf32>
    %42 = vector.broadcast %39 : vector<1x128xf32> to vector<8x128xf32>
    %43 = arith.addf %41, %42 : vector<8x128xf32>
    %cst_30 = arith.constant 0.000000e+00 : f32
    %44 = vector.broadcast %cst_30 : f32 to vector<8x128xf32>
    %45 = arith.maximumf %43, %44 : vector<8x128xf32>
    %c5 = arith.constant 5 : index
    %c0_31 = arith.constant 0 : index
    %c0_32 = arith.constant 0 : index
    %46 = vector.load %arg2[%c5, %c0_31, %c0_32] : memref<11x128x128xbf16, #tpu.memory_space<vmem>>, vector<1x128x128xbf16>
    %47 = vector.shape_cast %46 : vector<1x128x128xbf16> to vector<128x128xbf16>
    %c5_33 = arith.constant 5 : index
    %c0_34 = arith.constant 0 : index
    %48 = vector.load %arg3[%c5_33, %c0_34] : memref<11x128xf32, #tpu.memory_space<vmem>>, vector<1x128xf32>
    %49 = arith.truncf %45 : vector<8x128xf32> to vector<8x128xbf16>
    %cst_35 = arith.constant dense<0.000000e+00> : vector<8x128xf32>
    %50 = tpu.matmul %49, %47, %cst_35 {dimension_numbers = #tpu.dot_dimension_numbers<[1], [0], [0], [1], [0, 0, 1, 1], [], []>} : vector<8x128xbf16>, vector<128x128xbf16>, vector<8x128xf32> -> vector<8x128xf32>
    %51 = vector.broadcast %48 : vector<1x128xf32> to vector<8x128xf32>
    %52 = arith.addf %50, %51 : vector<8x128xf32>
    %cst_36 = arith.constant 0.000000e+00 : f32
    %53 = vector.broadcast %cst_36 : f32 to vector<8x128xf32>
    %54 = arith.maximumf %52, %53 : vector<8x128xf32>
    %c6 = arith.constant 6 : index
    %c0_37 = arith.constant 0 : index
    %c0_38 = arith.constant 0 : index
    %55 = vector.load %arg2[%c6, %c0_37, %c0_38] : memref<11x128x128xbf16, #tpu.memory_space<vmem>>, vector<1x128x128xbf16>
    %56 = vector.shape_cast %55 : vector<1x128x128xbf16> to vector<128x128xbf16>
    %c6_39 = arith.constant 6 : index
    %c0_40 = arith.constant 0 : index
    %57 = vector.load %arg3[%c6_39, %c0_40] : memref<11x128xf32, #tpu.memory_space<vmem>>, vector<1x128xf32>
    %58 = arith.truncf %54 : vector<8x128xf32> to vector<8x128xbf16>
    %cst_41 = arith.constant dense<0.000000e+00> : vector<8x128xf32>
    %59 = tpu.matmul %58, %56, %cst_41 {dimension_numbers = #tpu.dot_dimension_numbers<[1], [0], [0], [1], [0, 0, 1, 1], [], []>} : vector<8x128xbf16>, vector<128x128xbf16>, vector<8x128xf32> -> vector<8x128xf32>
    %60 = vector.broadcast %57 : vector<1x128xf32> to vector<8x128xf32>
    %61 = arith.addf %59, %60 : vector<8x128xf32>
    %cst_42 = arith.constant 0.000000e+00 : f32
    %62 = vector.broadcast %cst_42 : f32 to vector<8x128xf32>
    %63 = arith.maximumf %61, %62 : vector<8x128xf32>
    %c7 = arith.constant 7 : index
    %c0_43 = arith.constant 0 : index
    %c0_44 = arith.constant 0 : index
    %64 = vector.load %arg2[%c7, %c0_43, %c0_44] : memref<11x128x128xbf16, #tpu.memory_space<vmem>>, vector<1x128x128xbf16>
    %65 = vector.shape_cast %64 : vector<1x128x128xbf16> to vector<128x128xbf16>
    %c7_45 = arith.constant 7 : index
    %c0_46 = arith.constant 0 : index
    %66 = vector.load %arg3[%c7_45, %c0_46] : memref<11x128xf32, #tpu.memory_space<vmem>>, vector<1x128xf32>
    %67 = arith.truncf %63 : vector<8x128xf32> to vector<8x128xbf16>
    %cst_47 = arith.constant dense<0.000000e+00> : vector<8x128xf32>
    %68 = tpu.matmul %67, %65, %cst_47 {dimension_numbers = #tpu.dot_dimension_numbers<[1], [0], [0], [1], [0, 0, 1, 1], [], []>} : vector<8x128xbf16>, vector<128x128xbf16>, vector<8x128xf32> -> vector<8x128xf32>
    %69 = vector.broadcast %66 : vector<1x128xf32> to vector<8x128xf32>
    %70 = arith.addf %68, %69 : vector<8x128xf32>
    %cst_48 = arith.constant 0.000000e+00 : f32
    %71 = vector.broadcast %cst_48 : f32 to vector<8x128xf32>
    %72 = arith.maximumf %70, %71 : vector<8x128xf32>
    %c8 = arith.constant 8 : index
    %c0_49 = arith.constant 0 : index
    %c0_50 = arith.constant 0 : index
    %73 = vector.load %arg2[%c8, %c0_49, %c0_50] : memref<11x128x128xbf16, #tpu.memory_space<vmem>>, vector<1x128x128xbf16>
    %74 = vector.shape_cast %73 : vector<1x128x128xbf16> to vector<128x128xbf16>
    %c8_51 = arith.constant 8 : index
    %c0_52 = arith.constant 0 : index
    %75 = vector.load %arg3[%c8_51, %c0_52] : memref<11x128xf32, #tpu.memory_space<vmem>>, vector<1x128xf32>
    %76 = arith.truncf %72 : vector<8x128xf32> to vector<8x128xbf16>
    %cst_53 = arith.constant dense<0.000000e+00> : vector<8x128xf32>
    %77 = tpu.matmul %76, %74, %cst_53 {dimension_numbers = #tpu.dot_dimension_numbers<[1], [0], [0], [1], [0, 0, 1, 1], [], []>} : vector<8x128xbf16>, vector<128x128xbf16>, vector<8x128xf32> -> vector<8x128xf32>
    %78 = vector.broadcast %75 : vector<1x128xf32> to vector<8x128xf32>
    %79 = arith.addf %77, %78 : vector<8x128xf32>
    %cst_54 = arith.constant 0.000000e+00 : f32
    %80 = vector.broadcast %cst_54 : f32 to vector<8x128xf32>
    %81 = arith.maximumf %79, %80 : vector<8x128xf32>
    %c9 = arith.constant 9 : index
    %c0_55 = arith.constant 0 : index
    %c0_56 = arith.constant 0 : index
    %82 = vector.load %arg2[%c9, %c0_55, %c0_56] : memref<11x128x128xbf16, #tpu.memory_space<vmem>>, vector<1x128x128xbf16>
    %83 = vector.shape_cast %82 : vector<1x128x128xbf16> to vector<128x128xbf16>
    %c9_57 = arith.constant 9 : index
    %c0_58 = arith.constant 0 : index
    %84 = vector.load %arg3[%c9_57, %c0_58] : memref<11x128xf32, #tpu.memory_space<vmem>>, vector<1x128xf32>
    %85 = arith.truncf %81 : vector<8x128xf32> to vector<8x128xbf16>
    %cst_59 = arith.constant dense<0.000000e+00> : vector<8x128xf32>
    %86 = tpu.matmul %85, %83, %cst_59 {dimension_numbers = #tpu.dot_dimension_numbers<[1], [0], [0], [1], [0, 0, 1, 1], [], []>} : vector<8x128xbf16>, vector<128x128xbf16>, vector<8x128xf32> -> vector<8x128xf32>
    %87 = vector.broadcast %84 : vector<1x128xf32> to vector<8x128xf32>
    %88 = arith.addf %86, %87 : vector<8x128xf32>
    %cst_60 = arith.constant 0.000000e+00 : f32
    %89 = vector.broadcast %cst_60 : f32 to vector<8x128xf32>
    %90 = arith.maximumf %88, %89 : vector<8x128xf32>
    %c10 = arith.constant 10 : index
    %c0_61 = arith.constant 0 : index
    %c0_62 = arith.constant 0 : index
    %91 = vector.load %arg2[%c10, %c0_61, %c0_62] : memref<11x128x128xbf16, #tpu.memory_space<vmem>>, vector<1x128x128xbf16>
    %92 = vector.shape_cast %91 : vector<1x128x128xbf16> to vector<128x128xbf16>
    %c10_63 = arith.constant 10 : index
    %c0_64 = arith.constant 0 : index
    %93 = vector.load %arg3[%c10_63, %c0_64] : memref<11x128xf32, #tpu.memory_space<vmem>>, vector<1x128xf32>
    %94 = arith.truncf %90 : vector<8x128xf32> to vector<8x128xbf16>
    %cst_65 = arith.constant dense<0.000000e+00> : vector<8x128xf32>
    %95 = tpu.matmul %94, %92, %cst_65 {dimension_numbers = #tpu.dot_dimension_numbers<[1], [0], [0], [1], [0, 0, 1, 1], [], []>} : vector<8x128xbf16>, vector<128x128xbf16>, vector<8x128xf32> -> vector<8x128xf32>
    %96 = vector.broadcast %93 : vector<1x128xf32> to vector<8x128xf32>
    %97 = arith.addf %95, %96 : vector<8x128xf32>
    %c0_66 = arith.constant 0 : index
    %c0_67 = arith.constant 0 : index
    %98 = vector.load %arg4[%c0_66, %c0_67] : memref<8x128xf32, #tpu.memory_space<vmem>>, vector<8x128xf32>
    tpu.vector_store %arg4[%c0_66, %c0_67], %97 {strides = array<i32>} : memref<8x128xf32, #tpu.memory_space<vmem>>, vector<8x128xf32>,
    return
  }
  func.func @transform_0(%arg0: i32) -> (i32, i32) {
    %c0_i32 = arith.constant 0 : i32
    %c0_i32_0 = arith.constant 0 : i32
    return %arg0, %c0_i32 : i32, i32
  }
  func.func @transform_1(%arg0: i32) -> (i32, i32, i32) {
    %c0_i32 = arith.constant 0 : i32
    %c0_i32_0 = arith.constant 0 : i32
    %c0_i32_1 = arith.constant 0 : i32
    %c0_i32_2 = arith.constant 0 : i32
    return %c0_i32, %c0_i32_0, %c0_i32_1 : i32, i32, i32
  }
  func.func @transform_2(%arg0: i32) -> (i32, i32) {
    %c0_i32 = arith.constant 0 : i32
    %c0_i32_0 = arith.constant 0 : i32
    %c0_i32_1 = arith.constant 0 : i32
    return %c0_i32, %c0_i32_0 : i32, i32
  }
  func.func @transform_3(%arg0: i32) -> (i32, i32) {
    %c0_i32 = arith.constant 0 : i32
    %c0_i32_0 = arith.constant 0 : i32
    return %arg0, %c0_i32 : i32, i32
  }
}

</mosaic_0001>

<bundles_post_ra>
// kernel: mlp_pallas.1
= control target key start
LH: loop header
LB: loop body
LE: loop exit
PB: predicated region body
PF: predicated region fallthrough
CT: control target
= control target key end

     0   :  { %8 = vsyncpa [#allocation3], 0  ;;  %s2680_s0 = inlined_call_operand.hbm [shape: f32[16,128], index: 0, kind: input, shape index: {}]   ;;  %s2681_s1 = inlined_call_operand.hbm [shape: bf16[11,128,128], index: 1, kind: input, shape index: {}]   ;;  %s2682_s2 = inlined_call_operand.hbm [shape: f32[11,128], index: 2, kind: input, shape index: {}]   ;;  %s2683_s3 = inlined_call_operand.hbm [shape: f32[16,128], index: 3, kind: output, shape index: {}]  }
   0x1   :  { %10 = vsyncpa [#allocation3 + $0x1], 0 }
   0x2   :  { %11 = vsyncpa [#allocation6], 0 }
   0x3   :  { %12 = vsyncpa [#allocation4], 0 }
   0x4   :  { %14 = vsyncpa [#allocation4 + $0x1], 0  ;;  %s2334_s12 = smov 0   ;;  %s2336_s13 = smov 0  }
   0x5   :  { %s2338_s14 = smov 0   ;;  %s2340_s15 = smov 0  }
   0x6 LB: > { %s2355_s16 = sadd.s32 4294967295, %s2302_s15   ;;  %s1551_s17 = sadd.s32 4294967294, %s2302_s15   ;;  %s2302_s15 = sphi %s2340_s15, %s2703_s15   ;;  %s2298_s14 = sphi %s2338_s14, %s2702_s14   ;;  %s2294_s13 = sphi %s2336_s13, %s2701_s13   ;;  %s2290_s12 = sphi %s2334_s12, %s2700_s12  }
   0x7   : > { %p40_p0 = scmp.ne.s32.totalorder %s2294_s13, %s2290_s12  ;;  %p2684_p1 = scmp.eq.s32.totalorder %s2355_s16, 0 }
   0x8   : > { %p112_p3 = scmp.eq.s32.totalorder %s1551_s17, 1  ;;  %p1552_p5 = scmp.ge.s32.totalorder %s2302_s15, 1 }
   0x9   : > { %p2364_p4 = por %p2684_p1, %p40_p0  ;;  %p119_p7 = scmp.lt.s32.totalorder %s2302_s15, 3 }
   0xa   : > { %p2369_p6 = por %p112_p3, %p40_p0  ;;  %s2304_s21 = smov [#allocation5]  }
   0xb   : > { %s2687_s18 = scalar_select %p2364_p4, 1, 0 }
   0xc   : > { %s2688_s19 = scalar_select %p2369_p6, 1, 0 }
   0xd   : > { %p2374_p8 = pnand %p1552_p5, %p119_p7  ;;  %s131_s22 = sshll.u32 %s2304_s21, 4  ;;  %s2378_s22 = int_to_ptr.vmem [resolvable:$true] %s131_s22 }
   0xe   : > { %s2305_s24 = smov [#allocation7]   ;;  %s2146_s28 = scalar_lea.hbm %s2681_s1, 11264 }
   0xf   : > { %p1997_p9 = pneg %p2374_p8  ;;  %s144_s25 = sshll.u32 %s2305_s24, 4  ;;  %s2389_s25 = int_to_ptr.vmem [resolvable:$true] %s144_s25 }
  0x10   : > { %p2147_p12 = scmp.ne.s32.totalorder %s2681_s1, %s2146_s28  ;;  %p2153_p5 = scmp.lt.u32.totalorder %s2146_s28, %s2681_s1 }
  0x11   : > { %p2385_p11 = pnand %p1997_p9, %p2684_p1 }
  0x13   : > { %p2148_p13 = pneg %p2385_p11 }
  0x15   : > { %p2149_p0 = pnand %p2148_p13, %p2147_p12 }
  0x17   : > { %p2150_p3 = pneg %p2149_p0 }
  0x19   : > { %p2155_p7 = pnand %p2153_p5, %p2150_p3 }
  0x1b   : > { %2158 = shalt.err (!%p2155_p7)
}
  0x1c   : > { %s2159_s6 = scalar_lea.vmem %s2378_s22, 11264  ;;  %p2167_p2 = scmp.lt.s32.totalorder %s2378_s22, %s2378_s22 }
  0x1d   : > { %p2160_p9 = scmp.ne.s32.totalorder %s2378_s22, %s2159_s6  ;;  %p2168_p12 = scmp.lt.s32.totalorder %s2159_s6, %s2159_s6 }
  0x1f   : > { %p2162_p10 = pnand %p2160_p9, %p2148_p13  ;;  %p2169_p0 = por %p2168_p12, %p2167_p2 }
  0x21   : > { %p2163_p1 = pneg %p2162_p10 }
  0x23   : > { %p2170_p6 = pnand %p2169_p0, %p2163_p1 }
  0x25   : > { %2173 = shalt.err (!%p2170_p6)
}
  0x26   : > { %s2306_s7 = smov 64   ;;  %s2307_s8 = smov 4  }
  0x27   : > { %2000 = dma.hbm_to_vmem [thread:$0]  (!%p2385_p11), %s2681_s1, 11264, %s2378_s22, [#allocation6], %s2306_s7, %s2306_s7, %s2307_s8  }
  0x28   : > { %s2174_s21 = scalar_lea.hbm %s2682_s2, 256 }
  0x29   : > { %p2175_p2 = scmp.ne.s32.totalorder %s2682_s2, %s2174_s21  ;;  %p2181_p10 = scmp.lt.u32.totalorder %s2174_s21, %s2682_s2 }
  0x2b   : > { %p2177_p1 = pnand %p2175_p2, %p2148_p13 }
  0x2d   : > { %p2178_p6 = pneg %p2177_p1 }
  0x2f   : > { %p2183_p3 = pnand %p2181_p10, %p2178_p6 }
  0x31   : > { %2186 = shalt.err (!%p2183_p3)
}
  0x32   : > { %s2187_s22 = scalar_lea.vmem %s2389_s25, 256  ;;  %p2195_p12 = scmp.lt.s32.totalorder %s2389_s25, %s2389_s25 }
  0x33   : > { %p2188_p5 = scmp.ne.s32.totalorder %s2389_s25, %s2187_s22  ;;  %p2196_p0 = scmp.lt.s32.totalorder %s2187_s22, %s2187_s22 }
  0x35   : > { %p2190_p7 = pnand %p2188_p5, %p2148_p13  ;;  %p2197_p2 = por %p2196_p0, %p2195_p12 }
  0x37   : > { %p2191_p9 = pneg %p2190_p7 }
  0x39   : > { %p2198_p1 = pnand %p2197_p2, %p2191_p9 }
  0x3b   : > { %2201 = shalt.err (!%p2198_p1)
}
  0x3c   : > { %s2308_s29 = smov 128   ;;  %s2309_s30 = smov 8  }
  0x3d   : > { %2003 = dma.hbm_to_vmem [thread:$0]  (!%p2385_p11), %s2682_s2, 256, %s2389_s25, [#allocation6], %s2308_s29, %s2308_s29, %s2309_s30  }
  0x3e   : > { %s2444_s6 = sadd.s32 1, %s2302_s15   ;;  %s27_s8 = sadd.s32 1, %s2298_s14 }
  0x3f   : > { %s24_s7 = ssub.s32 %s2302_s15, %s2444_s6  ;;  %p34_p6 = scmp.ne.s32.totalorder %s2298_s14, %s2294_s13 }
  0x40   : > { %p25_p13 = scmp.eq.s32.totalorder %s24_s7, 0  ;;  %p35_p10 = scmp.eq.s32.totalorder %s2302_s15, 0 }
  0x41   : > { %p2691_p5 = scmp.eq.s32.totalorder %s2355_s16, 1  ;;  %p2014_p9 = scmp.lt.s32.totalorder %s2302_s15, 2 }
  0x42   : > { %s2453_s9 = scalar_select %p25_p13, %s2298_s14, %s27_s8  }
  0x43   : > { %p36_p3 = por %p35_p10, %p34_p6  ;;  %p2457_p7 = por %p2691_p5, %p34_p6 }
  0x44   : > { %s158_s23 = sand.u32 1, %s2298_s14   ;;  %s1557_s25 = sshll.u32 %s2302_s15, 7 }
  0x45   : > { %s2692_s10 = scalar_select %p2457_p7, 1, 0 }
  0x46   : > { %s1556_s11 = sshll.u32 %s158_s23, 3  ;;  %s2467_s24 = scalar_lea.hbm %s2680_s0, %s1557_s25 }
  0x47   : > { %s162_s26 = scalar_lea.vmem [#allocation2], %s1556_s11  ;;  %p2471_p11 = pnand %p2014_p9, %p36_p3 }
  0x48   : > { %s169_s27 = sshll.u32 %s162_s26, 4  ;;  %s159_s22 = scalar_lea.sflag [#allocation3], %s158_s23  ;;  %s2469_s27 = int_to_ptr.vmem [resolvable:$true] %s169_s27 }
  0x49   : > { %s2202_s29 = scalar_lea.hbm %s2467_s24, 128  ;;  %p2204_p0 = pneg %p2471_p11 }
  0x4a   : > { %p2203_p12 = scmp.ne.s32.totalorder %s2467_s24, %s2202_s29  ;;  %s2207_s5 = scalar_lea.hbm %s2680_s0, 256 }
  0x4b   : > { %p2208_p13 = scmp.lt.u32.totalorder %s2467_s24, %s2680_s0  ;;  %p2209_p6 = scmp.lt.u32.totalorder %s2207_s5, %s2202_s29 }
  0x4c   : > { %p2205_p2 = pnand %p2204_p0, %p2203_p12  ;;  %p2211_p3 = scmp.lt.u32.totalorder %s2202_s29, %s2467_s24 }
  0x4d   : > { %p2210_p10 = por %p2209_p6, %p2208_p13 }
  0x4e   : > { %p2206_p1 = pneg %p2205_p2 }
  0x4f   : > { %p2212_p5 = por %p2211_p3, %p2210_p10 }
  0x51   : > { %p2213_p9 = pnand %p2212_p5, %p2206_p1 }
  0x53   : > { %2216 = shalt.err (!%p2213_p9)
}
  0x54   : > { %s2217_s23 = scalar_lea.vmem %s2469_s27, 128  ;;  %s2310_s11 = smov [#allocation2]  }
  0x55   : > { %p2218_p12 = scmp.ne.s32.totalorder %s2469_s27, %s2217_s23  ;;  %s2222_s25 = sshll.u32 %s2310_s11, 4  ;;  %s2223_s25 = int_to_ptr.vmem [resolvable:$false] %s2222_s25 }
  0x56   : > { %s2224_s17 = scalar_lea.vmem %s2223_s25, 256  ;;  %p2225_p4 = scmp.lt.s32.totalorder %s2469_s27, %s2223_s25 }
  0x57   : > { %p2220_p2 = pnand %p2218_p12, %p2204_p0  ;;  %p2226_p13 = scmp.lt.s32.totalorder %s2224_s17, %s2217_s23 }
  0x59   : > { %p2221_p7 = pneg %p2220_p2  ;;  %p2227_p6 = por %p2226_p13, %p2225_p4 }
  0x5b   : > { %p2228_p10 = pnand %p2227_p6, %p2221_p7 }
  0x5d   : > { %2231 = shalt.err (!%p2228_p10)
}
  0x5e   : > { %2007 = dma.hbm_to_vmem [thread:$0]  (!%p2471_p11), %s2467_s24, 128, %s2469_s27, %s159_s22  }
  0x5f   : > { %178 = sbr.rel (%p2374_p8) target bundleno = 2548 (0x9f4), region = 32  ;;  %s2503_s21 = sand.u32 (!%p2374_p8), 1, %s2294_s13  }
  0x60   : > { %s1559_s26 = sshll.u32 (!%p2374_p8), %s2503_s21, 3  ;;  %s181_s29 = scalar_lea.sflag (!%p2374_p8), [#allocation3], %s2503_s21 }
  0x61   : > { %s2509_s30 = scalar_lea.vmem (!%p2374_p8), [#allocation2], %s1559_s26  ;;  %p2694_p4 = scmp.ne.s32.totalorder (!%p2374_p8), %s2687_s18, 0 }
  0x66   : > { %2277 = dma.done.wait (%p2694_p4), %s181_s29, 128  }
  0x67   : > { %2279 = vsyncadd (%p2694_p4), %s181_s29, 4294967168  ;;  %p2695_p7 = scmp.eq.s32.totalorder %s2355_s16, 0 }
  0x69   : > { %2281 = dma.done.wait (%p2695_p7), [#allocation6], 11520   ;;  %p2696_p8 = pmov %p2695_p7 }
  0x6a   : > { %v2311_v0 = vmov 0.0   ;;  %vm2312_vm0 = vmmov 0   ;;  %v2058_v1 = vld [vmem:[#allocation5] sm:$0xff]   ;;  %v2059_v2 = vld [vmem:[#allocation5 + $0x8] sm:$0xff]   ;;  %v2060_v3 = vld [vmem:[#allocation5 + $0x10] sm:$0xff]   ;;  %s1663_s18 = sshll.u32 %s2355_s16, 7 }
  0x6b   : > { %2283 = vsyncadd (%p2696_p8), [#allocation6], 4294955776  ;;  %1765 = vmatprep.subr.bf16.mxu0 %v2311_v0  ;;  %1781 = vmatprep.mubr.msk.bf16.mxu0 %vm2312_vm0, %v2311_v0  ;;  %v2066_v4 = vld [vmem:[#allocation5 + $0x40] sm:$0xff]   ;;  %v2061_v5 = vld [vmem:[#allocation5 + $0x18] sm:$0xff]   ;;  %s214_s20 = scalar_lea.vmem [#allocation8], %s1559_s26  ;;  %s2636_s22 = scalar_lea.hbm %s2683_s3, %s1663_s18 }
  0x6c   : > { %1785 = vmatprep.subr.bf16.mxu1 %v2311_v0  ;;  %1801 = vmatprep.mubr.msk.bf16.mxu1 %vm2312_vm0, %v2311_v0  ;;  %v2067_v6 = vld [vmem:[#allocation5 + $0x48] sm:$0xff]   ;;  %v2062_v7 = vld [vmem:[#allocation5 + $0x20] sm:$0xff]   ;;  %v2068_v8 = vld [vmem:[#allocation5 + $0x50] sm:$0xff]   ;;  %s1462_s24 = sshll.u32 %s214_s20, 4  ;;  %s1449_s16 = scalar_lea.sflag [#allocation4], %s2503_s21  ;;  %s2638_s24 = int_to_ptr.vmem [resolvable:$true] %s1462_s24 }
  0x6d   : > { %1766 = vmatpush3.bf16.msra.mxu0 %v2058_v1  ;;  %1786 = vmatpush3.bf16.msra.mxu1 %v2066_v4  ;;  %v2063_v9 = vld [vmem:[#allocation5 + $0x28] sm:$0xff]   ;;  %v2069_v10 = vld [vmem:[#allocation5 + $0x58] sm:$0xff]   ;;  %v2064_v11 = vld [vmem:[#allocation5 + $0x30] sm:$0xff]   ;;  %s2232_s4 = scalar_lea.vmem %s2638_s24, 128  ;;  %p2697_p0 = scmp.ne.s32.totalorder %s2692_s10, 0 }
  0x6e   : > { %1767 = vmatprep.subr.bf16.mxu0 %v2311_v0  ;;  %1787 = vmatprep.subr.bf16.mxu1 %v2311_v0  ;;  %v2070_v12 = vld [vmem:[#allocation5 + $0x60] sm:$0xff]   ;;  %v2065_v13 = vld [vmem:[#allocation5 + $0x38] sm:$0xff]   ;;  %v2071_v15 = vld [vmem:[#allocation5 + $0x68] sm:$0xff]   ;;  %p2233_p11 = scmp.ne.s32.totalorder %s2638_s24, %s2232_s4  ;;  %s2313_s5 = smov [#allocation8]  }
  0x6f   : > { %v216_v14 = vld [vmem:[%s2509_s30] sm:$0xff]  ;;  %v2074_v19 = vld [vmem:[#allocation5 + $0x80] sm:$0xff]   ;;  %v2075_v20 = vld [vmem:[#allocation5 + $0x88] sm:$0xff]   ;;  %s2236_s7 = sshll.u32 %s2313_s5, 4  ;;  %s2237_s7 = int_to_ptr.vmem [resolvable:$false] %s2236_s7 }
  0x70   : > { %v234_v16 = vpack.c.bf16 %v216_v14, %v216_v14  ;;  %v2072_v17 = vld [vmem:[#allocation5 + $0x70] sm:$0xff]   ;;  %v2073_v18 = vld [vmem:[#allocation5 + $0x78] sm:$0xff]   ;;  %v2078_v23 = vld [vmem:[#allocation5 + $0xa0] sm:$0xff]   ;;  %p2234_p1 = pnand %p2233_p11, %p2697_p0  ;;  %s2238_s8 = scalar_lea.vmem %s2237_s7, 256 }
  0x71   : > { %1768 = vmatpush3.bf16.msra.mxu0 %v2059_v2  ;;  %1788 = vmatpush3.bf16.msra.mxu1 %v2067_v6  ;;  %v2076_v21 = vld [vmem:[#allocation5 + $0x90] sm:$0xff]   ;;  %v2077_v22 = vld [vmem:[#allocation5 + $0x98] sm:$0xff]   ;;  %v2079_v24 = vld [vmem:[#allocation5 + $0xa8] sm:$0xff]   ;;  %p2239_p5 = scmp.lt.s32.totalorder %s2638_s24, %s2237_s7  ;;  %p2240_p9 = scmp.lt.s32.totalorder %s2238_s8, %s2232_s4 }
  0x72   : > { %1769 = vmatprep.subr.bf16.mxu0 %v2311_v0  ;;  %1789 = vmatprep.subr.bf16.mxu1 %v2311_v0  ;;  %v1563_v25 = vld [vmem:[#allocation7] ss:$0 sm:$0xff]  ;;  %v2080_v33 = vld [vmem:[#allocation5 + $0xb0] sm:$0xff]   ;;  %v2081_v34 = vld [vmem:[#allocation5 + $0xb8] sm:$0xff]   ;;  %p2235_p3 = pneg %p2234_p1 }
  0x73   : > { %v2082_v35 = vld [vmem:[#allocation5 + $0xc0] sm:$0xff]   ;;  %v2083_v36 = vld [vmem:[#allocation5 + $0xc8] sm:$0xff]   ;;  %v2084_v37 = vld [vmem:[#allocation5 + $0xd0] sm:$0xff]   ;;  %p2241_p12 = por %p2240_p9, %p2239_p5 }
  0x74   : > { %v2085_v38 = vld [vmem:[#allocation5 + $0xd8] sm:$0xff]   ;;  %v2086_v39 = vld [vmem:[#allocation5 + $0xe0] sm:$0xff]   ;;  %v2087_v40 = vld [vmem:[#allocation5 + $0xe8] sm:$0xff]  }
  0x75   : > { %1770 = vmatpush3.bf16.msra.mxu0 %v2060_v3  ;;  %1790 = vmatpush3.bf16.msra.mxu1 %v2068_v8  ;;  %v1572_v41 = vld [vmem:[#allocation7 + $0x1] ss:$0 sm:$0xff]  ;;  %v2088_v49 = vld [vmem:[#allocation5 + $0xf0] sm:$0xff]   ;;  %v2089_v50 = vld [vmem:[#allocation5 + $0xf8] sm:$0xff]   ;;  %p2242_p2 = pnand %p2241_p12, %p2235_p3 }
  0x76   : > { %1771 = vmatprep.subr.bf16.mxu0 %v2311_v0  ;;  %1791 = vmatprep.subr.bf16.mxu1 %v2311_v0  ;;  %v2090_v51 = vld [vmem:[#allocation5 + $0x100] sm:$0xff]   ;;  %v2091_v52 = vld [vmem:[#allocation5 + $0x108] sm:$0xff]   ;;  %v2092_v53 = vld [vmem:[#allocation5 + $0x110] sm:$0xff]  }
  0x77   : > { %v2093_v54 = vld [vmem:[#allocation5 + $0x118] sm:$0xff]   ;;  %v2094_v55 = vld [vmem:[#allocation5 + $0x120] sm:$0xff]   ;;  %v2095_v56 = vld [vmem:[#allocation5 + $0x128] sm:$0xff]  }
  0x78   : > { %v1581_v57 = vld [vmem:[#allocation7 + $0x2] ss:$0 sm:$0xff]  ;;  %v2096_v2 = vld [vmem:[#allocation5 + $0x130] sm:$0xff]   ;;  %v2097_v3 = vld [vmem:[#allocation5 + $0x138] sm:$0xff]  }
  0x79   : > { %1772 = vmatpush3.bf16.msra.mxu0 %v2061_v5  ;;  %1792 = vmatpush3.bf16.msra.mxu1 %v2069_v10  ;;  %v2098_v4 = vld [vmem:[#allocation5 + $0x140] sm:$0xff]   ;;  %v2099_v5 = vld [vmem:[#allocation5 + $0x148] sm:$0xff]   ;;  %v2100_v6 = vld [vmem:[#allocation5 + $0x150] sm:$0xff]  }
  0x7a   : > { %1773 = vmatprep.subr.bf16.mxu0 %v2311_v0  ;;  %1793 = vmatprep.subr.bf16.mxu1 %v2311_v0  ;;  %v2102_v8 = vld [vmem:[#allocation5 + $0x160] sm:$0xff]  }
  0x7b   : > { %v1590_v10 = vld [vmem:[#allocation7 + $0x3] ss:$0 sm:$0xff] }
  0x7d   : > { %1774 = vmatpush3.bf16.msra.mxu0 %v2062_v7  ;;  %1794 = vmatpush3.bf16.msra.mxu1 %v2070_v12  ;;  %v2101_v7 = vld [vmem:[#allocation5 + $0x158] sm:$0xff]  }
  0x7e   : > { %1775 = vmatprep.subr.bf16.mxu0 %v2311_v0  ;;  %1795 = vmatprep.subr.bf16.mxu1 %v2311_v0 }
  0x81   : > { %1776 = vmatpush3.bf16.msra.mxu0 %v2063_v9  ;;  %1796 = vmatpush3.bf16.msra.mxu1 %v2071_v15  ;;  %v2103_v9 = vld [vmem:[#allocation5 + $0x168] sm:$0xff]  }
  0x82   : > { %1777 = vmatprep.subr.bf16.mxu0 %v2311_v0  ;;  %1797 = vmatprep.subr.bf16.mxu1 %v2311_v0 }
  0x85   : > { %1778 = vmatpush3.bf16.msra.mxu0 %v2064_v11  ;;  %1798 = vmatpush3.bf16.msra.mxu1 %v2072_v17 }
  0x86   : > { %1779 = vmatprep.subr.bf16.mxu0 %v2311_v0  ;;  %1799 = vmatprep.subr.bf16.mxu1 %v2311_v0 }
  0x89   : > { %1780 = vmatpush3.bf16.msra.mxu0 %v2065_v13  ;;  %1800 = vmatpush3.bf16.msra.mxu1 %v2073_v18  ;;  %v2104_v18 = vld [vmem:[#allocation5 + $0x170] sm:$0xff]  }
  0x8a   : > { %1805 = vmatprep.subr.bf16.mxu0 %v2311_v0  ;;  %1825 = vmatprep.subr.bf16.mxu1 %v2311_v0 }
  0x8c   : > { %1782 = vmatmul.mubr.bf16.vlgmr.msra.gmra.mrb[0].mxu0 %v234_v16 }
  0x8d   : > { %1821 = vmatprep.mubr.msk.bf16.mxu0 %vm2312_vm0, %v2311_v0  ;;  %1806 = vmatpush3.bf16.msra.mxu0 %v2074_v19  ;;  %v2105_v19 = vld [vmem:[#allocation5 + $0x178] sm:$0xff]  }
  0x8e   : > { %1807 = vmatprep.subr.bf16.mxu0 %v2311_v0 }
  0x91   : > { %1808 = vmatpush3.bf16.msra.mxu0 %v2075_v20  ;;  %v2106_v20 = vld [vmem:[#allocation5 + $0x180] sm:$0xff]  }
  0x92   : > { %1809 = vmatprep.subr.bf16.mxu0 %v2311_v0 }
  0x95   : > { %1810 = vmatpush3.bf16.msra.mxu0 %v2076_v21  ;;  %v2107_v21 = vld [vmem:[#allocation5 + $0x188] sm:$0xff]  }
  0x96   : > { %1811 = vmatprep.subr.bf16.mxu0 %v2311_v0 }
  0x99   : > { %1812 = vmatpush3.bf16.msra.mxu0 %v2077_v22  ;;  %v2108_v22 = vld [vmem:[#allocation5 + $0x190] sm:$0xff]  }
  0x9a   : > { %1813 = vmatprep.subr.bf16.mxu0 %v2311_v0 }
  0x9d   : > { %1814 = vmatpush3.bf16.msra.mxu0 %v2078_v23  ;;  %v2109_v23 = vld [vmem:[#allocation5 + $0x198] sm:$0xff]  }
  0x9e   : > { %1815 = vmatprep.subr.bf16.mxu0 %v2311_v0 }
  0xa1   : > { %1816 = vmatpush3.bf16.msra.mxu0 %v2079_v24  ;;  %v2110_v24 = vld [vmem:[#allocation5 + $0x1a0] sm:$0xff]  }
  0xa2   : > { %1817 = vmatprep.subr.bf16.mxu0 %v2311_v0 }
  0xa5   : > { %1818 = vmatpush3.bf16.msra.mxu0 %v2080_v33 }
  0xa6   : > { %1819 = vmatprep.subr.bf16.mxu0 %v2311_v0 }
  0xa9   : > { %1820 = vmatpush3.bf16.msra.mxu0 %v2081_v34  ;;  %v2112_v34 = vld [vmem:[#allocation5 + $0x1b0] sm:$0xff]  }
  0xaa   : > { %1845 = vmatprep.subr.bf16.mxu0 %v2311_v0 }
 0x15f   : > { %v321_v26 = vpop.f32.mrb[0].mxu0 }
 0x160   : > { %v322_v27 = vadd.f32 %v1563_v25, %v321_v26  ;;  %v1783_v28 = vpop.f32.mrb[1].mxu0  ;;  %v2111_v25 = vld [vmem:[#allocation5 + $0x1a8] sm:$0xff]   ;;  %v1599_v26 = vld [vmem:[#allocation7 + $0x4] ss:$0 sm:$0xff] }
 0x161   : > { %v324_v29 = vpop.f32.mrb[2].mxu0 }
 0x162   : > { %v327_v30 = vmax.f32 %v322_v27, 0.0  ;;  %v1784_v31 = vpop.f32.mrb[3].mxu0 }
 0x164   : > { %v346_v32 = vpack.c.bf16 %v327_v30, %v327_v30 }
 0x166   : > { %1802 = vmatmul.mubr.bf16.vlgmr.msra.gmra.mrb[0].mxu1 %v346_v32 }
 0x167   : > { %1841 = vmatprep.mubr.msk.bf16.mxu1 %vm2312_vm0, %v2311_v0  ;;  %1826 = vmatpush3.bf16.msra.mxu1 %v2082_v35  ;;  %v2113_v35 = vld [vmem:[#allocation5 + $0x1b8] sm:$0xff]  }
 0x168   : > { %1827 = vmatprep.subr.bf16.mxu1 %v2311_v0 }
 0x16b   : > { %1828 = vmatpush3.bf16.msra.mxu1 %v2083_v36  ;;  %v2114_v36 = vld [vmem:[#allocation5 + $0x1c0] sm:$0xff]  }
 0x16c   : > { %1829 = vmatprep.subr.bf16.mxu1 %v2311_v0 }
 0x16f   : > { %1830 = vmatpush3.bf16.msra.mxu1 %v2084_v37  ;;  %v2115_v37 = vld [vmem:[#allocation5 + $0x1c8] sm:$0xff]  }
 0x170   : > { %1831 = vmatprep.subr.bf16.mxu1 %v2311_v0 }
 0x173   : > { %1832 = vmatpush3.bf16.msra.mxu1 %v2085_v38  ;;  %v2116_v38 = vld [vmem:[#allocation5 + $0x1d0] sm:$0xff]  }
 0x174   : > { %1833 = vmatprep.subr.bf16.mxu1 %v2311_v0 }
 0x177   : > { %1834 = vmatpush3.bf16.msra.mxu1 %v2086_v39  ;;  %v2117_v39 = vld [vmem:[#allocation5 + $0x1d8] sm:$0xff]  }
 0x178   : > { %1835 = vmatprep.subr.bf16.mxu1 %v2311_v0 }
 0x17b   : > { %1836 = vmatpush3.bf16.msra.mxu1 %v2087_v40  ;;  %v2118_v40 = vld [vmem:[#allocation5 + $0x1e0] sm:$0xff]  }
 0x17c   : > { %1837 = vmatprep.subr.bf16.mxu1 %v2311_v0 }
 0x17f   : > { %1838 = vmatpush3.bf16.msra.mxu1 %v2088_v49 }
 0x180   : > { %1839 = vmatprep.subr.bf16.mxu1 %v2311_v0 }
 0x183   : > { %1840 = vmatpush3.bf16.msra.mxu1 %v2089_v50  ;;  %v2120_v50 = vld [vmem:[#allocation5 + $0x1f0] sm:$0xff]  }
 0x184   : > { %1865 = vmatprep.subr.bf16.mxu1 %v2311_v0 }
 0x239   : > { %v433_v42 = vpop.f32.mrb[0].mxu1 }
 0x23a   : > { %v434_v43 = vadd.f32 %v1572_v41, %v433_v42  ;;  %v1803_v44 = vpop.f32.mrb[1].mxu1  ;;  %v2119_v41 = vld [vmem:[#allocation5 + $0x1e8] sm:$0xff]   ;;  %v1608_v42 = vld [vmem:[#allocation7 + $0x5] ss:$0 sm:$0xff] }
 0x23b   : > { %v436_v45 = vpop.f32.mrb[2].mxu1 }
 0x23c   : > { %v439_v46 = vmax.f32 %v434_v43, 0.0  ;;  %v1804_v47 = vpop.f32.mrb[3].mxu1 }
 0x23e   : > { %v458_v48 = vpack.c.bf16 %v439_v46, %v439_v46 }
 0x240   : > { %1822 = vmatmul.mubr.bf16.vlgmr.msra.gmra.mrb[4].mxu0 %v458_v48 }
 0x241   : > { %1861 = vmatprep.mubr.msk.bf16.mxu0 %vm2312_vm0, %v2311_v0  ;;  %1846 = vmatpush3.bf16.msra.mxu0 %v2090_v51  ;;  %v2121_v51 = vld [vmem:[#allocation5 + $0x1f8] sm:$0xff]  }
 0x242   : > { %1847 = vmatprep.subr.bf16.mxu0 %v2311_v0 }
 0x245   : > { %1848 = vmatpush3.bf16.msra.mxu0 %v2091_v52  ;;  %v2122_v52 = vld [vmem:[#allocation5 + $0x200] sm:$0xff]  }
 0x246   : > { %1849 = vmatprep.subr.bf16.mxu0 %v2311_v0 }
 0x249   : > { %1850 = vmatpush3.bf16.msra.mxu0 %v2092_v53  ;;  %v2123_v53 = vld [vmem:[#allocation5 + $0x208] sm:$0xff]  }
 0x24a   : > { %1851 = vmatprep.subr.bf16.mxu0 %v2311_v0 }
 0x24d   : > { %1852 = vmatpush3.bf16.msra.mxu0 %v2093_v54  ;;  %v2124_v54 = vld [vmem:[#allocation5 + $0x210] sm:$0xff]  }
 0x24e   : > { %1853 = vmatprep.subr.bf16.mxu0 %v2311_v0 }
 0x251   : > { %1854 = vmatpush3.bf16.msra.mxu0 %v2094_v55  ;;  %v2125_v55 = vld [vmem:[#allocation5 + $0x218] sm:$0xff]  }
 0x252   : > { %1855 = vmatprep.subr.bf16.mxu0 %v2311_v0 }
 0x255   : > { %1856 = vmatpush3.bf16.msra.mxu0 %v2095_v56  ;;  %v2126_v56 = vld [vmem:[#allocation5 + $0x220] sm:$0xff]  }
 0x256   : > { %1857 = vmatprep.subr.bf16.mxu0 %v2311_v0 }
 0x259   : > { %1858 = vmatpush3.bf16.msra.mxu0 %v2096_v2 }
 0x25a   : > { %1859 = vmatprep.subr.bf16.mxu0 %v2311_v0 }
 0x25d   : > { %1860 = vmatpush3.bf16.msra.mxu0 %v2097_v3  ;;  %v2128_v3 = vld [vmem:[#allocation5 + $0x230] sm:$0xff]  }
 0x25e   : > { %1885 = vmatprep.subr.bf16.mxu0 %v2311_v0 }
 0x313   : > { %v545_v58 = vpop.f32.mrb[4].mxu0 }
 0x314   : > { %v546_v59 = vadd.f32 %v1581_v57, %v545_v58  ;;  %v1823_v60 = vpop.f32.mrb[5].mxu0  ;;  %v2127_v57 = vld [vmem:[#allocation5 + $0x228] sm:$0xff]   ;;  %v1617_v58 = vld [vmem:[#allocation7 + $0x6] ss:$0 sm:$0xff] }
 0x315   : > { %v548_v61 = vpop.f32.mrb[6].mxu0 }
 0x316   : > { %v551_v62 = vmax.f32 %v546_v59, 0.0  ;;  %v1824_v63 = vpop.f32.mrb[7].mxu0 }
 0x318   : > { %v570_v1 = vpack.c.bf16 %v551_v62, %v551_v62 }
 0x31a   : > { %1842 = vmatmul.mubr.bf16.vlgmr.msra.gmra.mrb[4].mxu1 %v570_v1 }
 0x31b   : > { %1881 = vmatprep.mubr.msk.bf16.mxu1 %vm2312_vm0, %v2311_v0  ;;  %1866 = vmatpush3.bf16.msra.mxu1 %v2098_v4  ;;  %v2129_v4 = vld [vmem:[#allocation5 + $0x238] sm:$0xff]  }
 0x31c   : > { %1867 = vmatprep.subr.bf16.mxu1 %v2311_v0 }
 0x31f   : > { %1868 = vmatpush3.bf16.msra.mxu1 %v2099_v5  ;;  %v2130_v5 = vld [vmem:[#allocation5 + $0x240] sm:$0xff]  }
 0x320   : > { %1869 = vmatprep.subr.bf16.mxu1 %v2311_v0 }
 0x323   : > { %1870 = vmatpush3.bf16.msra.mxu1 %v2100_v6  ;;  %v2131_v6 = vld [vmem:[#allocation5 + $0x248] sm:$0xff]  }
 0x324   : > { %1871 = vmatprep.subr.bf16.mxu1 %v2311_v0 }
 0x327   : > { %1872 = vmatpush3.bf16.msra.mxu1 %v2101_v7  ;;  %v2132_v7 = vld [vmem:[#allocation5 + $0x250] sm:$0xff]  }
 0x328   : > { %1873 = vmatprep.subr.bf16.mxu1 %v2311_v0 }
 0x32b   : > { %1874 = vmatpush3.bf16.msra.mxu1 %v2102_v8  ;;  %v2133_v8 = vld [vmem:[#allocation5 + $0x258] sm:$0xff]  }
 0x32c   : > { %1875 = vmatprep.subr.bf16.mxu1 %v2311_v0 }
 0x32f   : > { %1876 = vmatpush3.bf16.msra.mxu1 %v2103_v9  ;;  %v2134_v9 = vld [vmem:[#allocation5 + $0x260] sm:$0xff]  }
 0x330   : > { %1877 = vmatprep.subr.bf16.mxu1 %v2311_v0 }
 0x333   : > { %1878 = vmatpush3.bf16.msra.mxu1 %v2104_v18 }
 0x334   : > { %1879 = vmatprep.subr.bf16.mxu1 %v2311_v0 }
 0x337   : > { %1880 = vmatpush3.bf16.msra.mxu1 %v2105_v19  ;;  %v2136_v19 = vld [vmem:[#allocation5 + $0x270] sm:$0xff]  }
 0x338   : > { %1905 = vmatprep.subr.bf16.mxu1 %v2311_v0 }
 0x3ed   : > { %v657_v11 = vpop.f32.mrb[4].mxu1 }
 0x3ee   : > { %v658_v12 = vadd.f32 %v1590_v10, %v657_v11  ;;  %v1843_v13 = vpop.f32.mrb[5].mxu1  ;;  %v2135_v10 = vld [vmem:[#allocation5 + $0x268] sm:$0xff]   ;;  %v1626_v11 = vld [vmem:[#allocation7 + $0x7] ss:$0 sm:$0xff] }
 0x3ef   : > { %v660_v14 = vpop.f32.mrb[6].mxu1 }
 0x3f0   : > { %v663_v15 = vmax.f32 %v658_v12, 0.0  ;;  %v1844_v16 = vpop.f32.mrb[7].mxu1 }
 0x3f2   : > { %v682_v17 = vpack.c.bf16 %v663_v15, %v663_v15 }
 0x3f4   : > { %1862 = vmatmul.mubr.bf16.vlgmr.msra.gmra.mrb[8].mxu0 %v682_v17 }
 0x3f5   : > { %1901 = vmatprep.mubr.msk.bf16.mxu0 %vm2312_vm0, %v2311_v0  ;;  %1886 = vmatpush3.bf16.msra.mxu0 %v2106_v20  ;;  %v2137_v20 = vld [vmem:[#allocation5 + $0x278] sm:$0xff]  }
 0x3f6   : > { %1887 = vmatprep.subr.bf16.mxu0 %v2311_v0 }
 0x3f9   : > { %1888 = vmatpush3.bf16.msra.mxu0 %v2107_v21  ;;  %v2138_v21 = vld [vmem:[#allocation5 + $0x280] sm:$0xff]  }
 0x3fa   : > { %1889 = vmatprep.subr.bf16.mxu0 %v2311_v0 }
 0x3fd   : > { %1890 = vmatpush3.bf16.msra.mxu0 %v2108_v22  ;;  %v2139_v22 = vld [vmem:[#allocation5 + $0x288] sm:$0xff]  }
 0x3fe   : > { %1891 = vmatprep.subr.bf16.mxu0 %v2311_v0 }
 0x401   : > { %1892 = vmatpush3.bf16.msra.mxu0 %v2109_v23  ;;  %v2140_v23 = vld [vmem:[#allocation5 + $0x290] sm:$0xff]  }
 0x402   : > { %1893 = vmatprep.subr.bf16.mxu0 %v2311_v0 }
 0x405   : > { %1894 = vmatpush3.bf16.msra.mxu0 %v2110_v24  ;;  %v2141_v24 = vld [vmem:[#allocation5 + $0x298] sm:$0xff]  }
 0x406   : > { %1895 = vmatprep.subr.bf16.mxu0 %v2311_v0 }
 0x409   : > { %1896 = vmatpush3.bf16.msra.mxu0 %v2111_v25  ;;  %v2142_v25 = vld [vmem:[#allocation5 + $0x2a0] sm:$0xff]  }
 0x40a   : > { %1897 = vmatprep.subr.bf16.mxu0 %v2311_v0 }
 0x40d   : > { %1898 = vmatpush3.bf16.msra.mxu0 %v2112_v34 }
 0x40e   : > { %1899 = vmatprep.subr.bf16.mxu0 %v2311_v0 }
 0x411   : > { %1900 = vmatpush3.bf16.msra.mxu0 %v2113_v35  ;;  %v2144_v35 = vld [vmem:[#allocation5 + $0x2b0] sm:$0xff]  }
 0x412   : > { %1925 = vmatprep.subr.bf16.mxu0 %v2311_v0 }
 0x4c7   : > { %v769_v27 = vpop.f32.mrb[8].mxu0 }
 0x4c8   : > { %v770_v28 = vadd.f32 %v1599_v26, %v769_v27  ;;  %v1863_v29 = vpop.f32.mrb[9].mxu0  ;;  %v2143_v26 = vld [vmem:[#allocation5 + $0x2a8] sm:$0xff]  }
 0x4c9   : > { %v772_v30 = vpop.f32.mrb[10].mxu0  ;;  %v1635_v27 = vld [vmem:[#allocation7 + $0x8] ss:$0 sm:$0xff] }
 0x4ca   : > { %v775_v31 = vmax.f32 %v770_v28, 0.0  ;;  %v1864_v32 = vpop.f32.mrb[11].mxu0 }
 0x4cc   : > { %v794_v33 = vpack.c.bf16 %v775_v31, %v775_v31 }
 0x4ce   : > { %1882 = vmatmul.mubr.bf16.vlgmr.msra.gmra.mrb[8].mxu1 %v794_v33 }
 0x4cf   : > { %1921 = vmatprep.mubr.msk.bf16.mxu1 %vm2312_vm0, %v2311_v0  ;;  %1906 = vmatpush3.bf16.msra.mxu1 %v2114_v36  ;;  %v2145_v36 = vld [vmem:[#allocation5 + $0x2b8] sm:$0xff]  }
 0x4d0   : > { %1907 = vmatprep.subr.bf16.mxu1 %v2311_v0 }
 0x4d3   : > { %1908 = vmatpush3.bf16.msra.mxu1 %v2115_v37  ;;  %v1644_v37 = vld [vmem:[#allocation7 + $0x9] ss:$0 sm:$0xff] }
 0x4d4   : > { %1909 = vmatprep.subr.bf16.mxu1 %v2311_v0 }
 0x4d7   : > { %1910 = vmatpush3.bf16.msra.mxu1 %v2116_v38 }
 0x4d8   : > { %1911 = vmatprep.subr.bf16.mxu1 %v2311_v0 }
 0x4db   : > { %1912 = vmatpush3.bf16.msra.mxu1 %v2117_v39 }
 0x4dc   : > { %1913 = vmatprep.subr.bf16.mxu1 %v2311_v0 }
 0x4df   : > { %1914 = vmatpush3.bf16.msra.mxu1 %v2118_v40 }
 0x4e0   : > { %1915 = vmatprep.subr.bf16.mxu1 %v2311_v0 }
 0x4e3   : > { %1916 = vmatpush3.bf16.msra.mxu1 %v2119_v41 }
 0x4e4   : > { %1917 = vmatprep.subr.bf16.mxu1 %v2311_v0 }
 0x4e7   : > { %1918 = vmatpush3.bf16.msra.mxu1 %v2120_v50 }
 0x4e8   : > { %1919 = vmatprep.subr.bf16.mxu1 %v2311_v0 }
 0x4eb   : > { %1920 = vmatpush3.bf16.msra.mxu1 %v2121_v51 }
 0x4ec   : > { %1945 = vmatprep.subr.bf16.mxu1 %v2311_v0 }
 0x5a1   : > { %v881_v43 = vpop.f32.mrb[8].mxu1 }
 0x5a2   : > { %v882_v44 = vadd.f32 %v1608_v42, %v881_v43  ;;  %v1883_v45 = vpop.f32.mrb[9].mxu1 }
 0x5a3   : > { %v884_v46 = vpop.f32.mrb[10].mxu1  ;;  %v1653_v45 = vld [vmem:[#allocation7 + $0xa] ss:$0 sm:$0xff] }
 0x5a4   : > { %v887_v47 = vmax.f32 %v882_v44, 0.0  ;;  %v1884_v48 = vpop.f32.mrb[11].mxu1 }
 0x5a6   : > { %v906_v49 = vpack.c.bf16 %v887_v47, %v887_v47 }
 0x5a8   : > { %1902 = vmatmul.mubr.bf16.vlgmr.msra.gmra.mrb[12].mxu0 %v906_v49 }
 0x5a9   : > { %1941 = vmatprep.mubr.msk.bf16.mxu0 %vm2312_vm0, %v2311_v0  ;;  %1926 = vmatpush3.bf16.msra.mxu0 %v2122_v52 }
 0x5aa   : > { %1927 = vmatprep.subr.bf16.mxu0 %v2311_v0 }
 0x5ad   : > { %1928 = vmatpush3.bf16.msra.mxu0 %v2123_v53 }
 0x5ae   : > { %1929 = vmatprep.subr.bf16.mxu0 %v2311_v0 }
 0x5b1   : > { %1930 = vmatpush3.bf16.msra.mxu0 %v2124_v54 }
 0x5b2   : > { %1931 = vmatprep.subr.bf16.mxu0 %v2311_v0 }
 0x5b5   : > { %1932 = vmatpush3.bf16.msra.mxu0 %v2125_v55 }
 0x5b6   : > { %1933 = vmatprep.subr.bf16.mxu0 %v2311_v0 }
 0x5b9   : > { %1934 = vmatpush3.bf16.msra.mxu0 %v2126_v56 }
 0x5ba   : > { %1935 = vmatprep.subr.bf16.mxu0 %v2311_v0 }
 0x5bd   : > { %1936 = vmatpush3.bf16.msra.mxu0 %v2127_v57 }
 0x5be   : > { %1937 = vmatprep.subr.bf16.mxu0 %v2311_v0 }
 0x5c1   : > { %1938 = vmatpush3.bf16.msra.mxu0 %v2128_v3 }
 0x5c2   : > { %1939 = vmatprep.subr.bf16.mxu0 %v2311_v0 }
 0x5c5   : > { %1940 = vmatpush3.bf16.msra.mxu0 %v2129_v4 }
 0x5c6   : > { %1965 = vmatprep.subr.bf16.mxu0 %v2311_v0 }
 0x67b   : > { %v993_v59 = vpop.f32.mrb[12].mxu0 }
 0x67c   : > { %v994_v60 = vadd.f32 %v1617_v58, %v993_v59  ;;  %v1903_v61 = vpop.f32.mrb[13].mxu0 }
 0x67d   : > { %v996_v62 = vpop.f32.mrb[14].mxu0 }
 0x67e   : > { %v999_v63 = vmax.f32 %v994_v60, 0.0  ;;  %v1904_v1 = vpop.f32.mrb[15].mxu0 }
 0x680   : > { %v1018_v2 = vpack.c.bf16 %v999_v63, %v999_v63 }
 0x682   : > { %1922 = vmatmul.mubr.bf16.vlgmr.msra.gmra.mrb[12].mxu1 %v1018_v2 }
 0x683   : > { %1961 = vmatprep.mubr.msk.bf16.mxu1 %vm2312_vm0, %v2311_v0  ;;  %1946 = vmatpush3.bf16.msra.mxu1 %v2130_v5 }
 0x684   : > { %1947 = vmatprep.subr.bf16.mxu1 %v2311_v0 }
 0x687   : > { %1948 = vmatpush3.bf16.msra.mxu1 %v2131_v6 }
 0x688   : > { %1949 = vmatprep.subr.bf16.mxu1 %v2311_v0 }
 0x68b   : > { %1950 = vmatpush3.bf16.msra.mxu1 %v2132_v7 }
 0x68c   : > { %1951 = vmatprep.subr.bf16.mxu1 %v2311_v0 }
 0x68f   : > { %1952 = vmatpush3.bf16.msra.mxu1 %v2133_v8 }
 0x690   : > { %1953 = vmatprep.subr.bf16.mxu1 %v2311_v0 }
 0x693   : > { %1954 = vmatpush3.bf16.msra.mxu1 %v2134_v9 }
 0x694   : > { %1955 = vmatprep.subr.bf16.mxu1 %v2311_v0 }
 0x697   : > { %1956 = vmatpush3.bf16.msra.mxu1 %v2135_v10 }
 0x698   : > { %1957 = vmatprep.subr.bf16.mxu1 %v2311_v0 }
 0x69b   : > { %1958 = vmatpush3.bf16.msra.mxu1 %v2136_v19 }
 0x69c   : > { %1959 = vmatprep.subr.bf16.mxu1 %v2311_v0 }
 0x69f   : > { %1960 = vmatpush3.bf16.msra.mxu1 %v2137_v20 }
 0x755   : > { %v1105_v12 = vpop.f32.mrb[12].mxu1 }
 0x756   : > { %v1106_v13 = vadd.f32 %v1626_v11, %v1105_v12  ;;  %v1923_v14 = vpop.f32.mrb[13].mxu1 }
 0x757   : > { %v1108_v15 = vpop.f32.mrb[14].mxu1 }
 0x758   : > { %v1111_v16 = vmax.f32 %v1106_v13, 0.0  ;;  %v1924_v17 = vpop.f32.mrb[15].mxu1 }
 0x75a   : > { %v1130_v18 = vpack.c.bf16 %v1111_v16, %v1111_v16 }
 0x75c   : > { %1942 = vmatmul.mubr.bf16.vlgmr.msra.gmra.mrb[16].mxu0 %v1130_v18 }
 0x75d   : > { %1981 = vmatprep.mubr.msk.bf16.mxu0 %vm2312_vm0, %v2311_v0  ;;  %1966 = vmatpush3.bf16.msra.mxu0 %v2138_v21 }
 0x75e   : > { %1967 = vmatprep.subr.bf16.mxu0 %v2311_v0 }
 0x761   : > { %1968 = vmatpush3.bf16.msra.mxu0 %v2139_v22 }
 0x762   : > { %1969 = vmatprep.subr.bf16.mxu0 %v2311_v0 }
 0x765   : > { %1970 = vmatpush3.bf16.msra.mxu0 %v2140_v23 }
 0x766   : > { %1971 = vmatprep.subr.bf16.mxu0 %v2311_v0 }
 0x769   : > { %1972 = vmatpush3.bf16.msra.mxu0 %v2141_v24 }
 0x76a   : > { %1973 = vmatprep.subr.bf16.mxu0 %v2311_v0 }
 0x76d   : > { %1974 = vmatpush3.bf16.msra.mxu0 %v2142_v25 }
 0x76e   : > { %1975 = vmatprep.subr.bf16.mxu0 %v2311_v0 }
 0x771   : > { %1976 = vmatpush3.bf16.msra.mxu0 %v2143_v26 }
 0x772   : > { %1977 = vmatprep.subr.bf16.mxu0 %v2311_v0 }
 0x775   : > { %1978 = vmatpush3.bf16.msra.mxu0 %v2144_v35 }
 0x776   : > { %1979 = vmatprep.subr.bf16.mxu0 %v2311_v0 }
 0x779   : > { %1980 = vmatpush3.bf16.msra.mxu0 %v2145_v36 }
 0x82f   : > { %v1217_v28 = vpop.f32.mrb[16].mxu0 }
 0x830   : > { %v1218_v29 = vadd.f32 %v1635_v27, %v1217_v28  ;;  %v1943_v30 = vpop.f32.mrb[17].mxu0 }
 0x831   : > { %v1220_v31 = vpop.f32.mrb[18].mxu0 }
 0x832   : > { %v1223_v32 = vmax.f32 %v1218_v29, 0.0  ;;  %v1944_v33 = vpop.f32.mrb[19].mxu0 }
 0x834   : > { %v1242_v34 = vpack.c.bf16 %v1223_v32, %v1223_v32 }
 0x836   : > { %1962 = vmatmul.mubr.bf16.vlgmr.msra.gmra.mrb[16].mxu1 %v1242_v34 }
 0x909   : > { %v1329_v38 = vpop.f32.mrb[16].mxu1 }
 0x90a   : > { %v1330_v39 = vadd.f32 %v1644_v37, %v1329_v38  ;;  %v1963_v40 = vpop.f32.mrb[17].mxu1 }
 0x90b   : > { %v1332_v41 = vpop.f32.mrb[18].mxu1 }
 0x90c   : > { %v1335_v42 = vmax.f32 %v1330_v39, 0.0  ;;  %v1964_v43 = vpop.f32.mrb[19].mxu1 }
 0x90e   : > { %v1354_v44 = vpack.c.bf16 %v1335_v42, %v1335_v42 }
 0x910   : > { %1982 = vmatmul.mubr.bf16.vlgmr.msra.gmra.mrb[20].mxu0 %v1354_v44 }
 0x9e3   : > { %v1441_v46 = vpop.f32.mrb[20].mxu0 }
 0x9e4   : > { %v1442_v0 = vadd.f32 %v1653_v45, %v1441_v46  ;;  %v1983_v47 = vpop.f32.mrb[21].mxu0 }
 0x9e5   : > { %v1444_v48 = vpop.f32.mrb[22].mxu0 }
 0x9e6   : > { %1447 = vst [vmem:[%s214_s20] sm:$0xff] %v1442_v0  ;;  %v1984_v49 = vpop.f32.mrb[23].mxu0 }
 0x9e7   : > { %2245 = shalt.err (!%p2242_p2)
}
 0x9e8   : > { %s2246_s23 = scalar_lea.hbm %s2636_s22, 128  ;;  %s2250_s17 = scalar_lea.hbm %s2683_s3, 256 }
 0x9e9   : > { %p2247_p13 = scmp.ne.s32.totalorder %s2636_s22, %s2246_s23  ;;  %p2251_p4 = scmp.lt.u32.totalorder %s2636_s22, %s2683_s3 }
 0x9ea   : > { %p2252_p7 = scmp.lt.u32.totalorder %s2250_s17, %s2246_s23  ;;  %p2254_p11 = scmp.lt.u32.totalorder %s2246_s23, %s2636_s22 }
 0x9eb   : > { %p2248_p6 = pnand %p2247_p13, %p2697_p0 }
 0x9ec   : > { %p2253_p8 = por %p2252_p7, %p2251_p4 }
 0x9ed   : > { %p2249_p10 = pneg %p2248_p6 }
 0x9ee   : > { %p2255_p1 = por %p2254_p11, %p2253_p8 }
 0x9f0   : > { %p2256_p3 = pnand %p2255_p1, %p2249_p10 }
 0x9f2   : > { %2259 = shalt.err (!%p2256_p3)
}
 0x9f3   : > { %1995 = dma.vmem_to_hbm [thread:$0]  (%p2697_p0), %s2638_s24, 128, %s2636_s22, %s1449_s16  }
 0x9f4 PF: > { %s1474_s29 = sand.u32 1, %s2290_s12   ;;  %p2698_p5 = scmp.ne.s32.totalorder %s2688_s19, 0 }
 0x9f5   : > { %p2699_p9 = scmp.ge.s32.totalorder %s2302_s15, 2  ;;  %s1475_s30 = scalar_lea.sflag [#allocation4], %s1474_s29 }
 0x9f7   : > { %p2009_p12 = pnand %p2699_p9, %p2698_p5 }
 0x9f9   : > { %2285 = dma.done.wait (!%p2009_p12), %s1475_s30, 128  }
 0x9fa   : > { %2287 = vsyncadd (!%p2009_p12), %s1475_s30, 4294967168  ;;  %p17_p2 = scmp.ge.s32.totalorder %s2444_s6, 4   ;;  %s2700_s12 = smov %s2294_s13 }
 0x9fb   : > { %s2701_s13 = smov %s2298_s14  ;;  %s2702_s14 = smov %s2453_s9 }
 0x9fc   : > { %s2703_s15 = smov %s2444_s6  ;;  %19 = sbr.rel (!%p17_p2) target bundleno = 6 (0x6), region = 95 }
 0xa03   :  { %1480 = vsyncpa [#allocation3], 1 }
 0xa04   :  { %1482 = vsyncpa [#allocation3 + $0x1], 1 }
 0xa05   :  { %1483 = vsyncpa [#allocation6], 1 }
 0xa06   :  { %1484 = vsyncpa [#allocation4], 1 }
 0xa07   :  { %1486 = vsyncpa [#allocation4 + $0x1], 1 }

</bundles_post_ra>
